<compile_context>
chip_gen: v5e
topology: v5e:2x2
jax: 0.10.0
libtpu: 0.0.40
codegen_flags: <defaults>
</compile_context>

<pallas_src>
import functools

import jax
import jax.numpy as jnp
from jax.experimental import pallas as pl
from jax.experimental.pallas import tpu as pltpu


_LANE = 128
_VMEM_TILE_BUDGET = 20 * 1024 * 1024   # target double-buffered working set
_VMEM_LIMIT_BYTES = 32 * 1024 * 1024   # scoped-VMEM request (safe on v5e/v6e/v7x)


def _mm_kernel_single(a_ref, b_ref, o_ref, *, precision):
    # Whole K in one tile: single MXU pass, write straight to output.
    o_ref[...] = jnp.dot(
        a_ref[...], b_ref[...],
        preferred_element_type=jnp.float32, precision=precision,
    ).astype(o_ref.dtype)


def _mm_kernel_acc(a_ref, b_ref, o_ref, acc_ref, *, precision):
    # a_ref: (tm, tk)  b_ref: (tk, tl)  o_ref: (tm, tl)  acc_ref: (tm, tl) f32
    @pl.when(pl.program_id(2) == 0)
    def _():
        acc_ref[...] = jnp.zeros_like(acc_ref)

    acc_ref[...] += jnp.dot(
        a_ref[...], b_ref[...],
        preferred_element_type=jnp.float32, precision=precision,
    )

    @pl.when(pl.program_id(2) == pl.num_programs(2) - 1)
    def _():
        o_ref[...] = acc_ref[...].astype(o_ref.dtype)


def _pick_tile(dim, target, align):
    """Largest t <= min(dim, target) with dim % t == 0 and t % align == 0.

    Falls back to the full dim (a full-extent block is always a legal block
    shape, even if not 8/128 aligned), never to an unaligned partial tile.
    """
    if dim <= target:
        return dim
    t = (target // align) * align
    while t >= align:
        if dim % t == 0:
            return t
        t -= align
    return dim


def _footprint_bytes(tm, tl, tk, itemsize, nk):
    # Double-buffered A, B and output tiles (+ f32 accumulator when nk > 1).
    buf = 2 * (tm * tk + tk * tl + tm * tl) * itemsize
    if nk > 1:
        buf += tm * tl * 4
    return buf


def tensor_matmul(A, B, *, tm=512, tl=512, tk=1024, collapse_k=True, precision=None):
    """C[n, m, l] = sum_k A[n, m, k] * B[k, l]  (torch.matmul(A, B) semantics)."""
    N, M, K = A.shape
    K2, L = B.shape
    assert K == K2, "contraction dims must match"

    if precision is None and A.dtype == jnp.float32 and B.dtype == jnp.float32:
        precision = jax.lax.Precision.HIGHEST  # torch float32 parity

    Mp = N * M
    A2 = A.reshape(Mp, K)  # free: row-major contiguous

    itemsize = jnp.dtype(A.dtype).itemsize
    sub_align = {4: 8, 2: 16, 1: 32}.get(itemsize, 8)

    # --- tile selection ------------------------------------------------------
    tm = _pick_tile(Mp, tm, sub_align)
    tl = _pick_tile(L, max(tl, _LANE), _LANE)

    # K-resident fast path: collapse the whole reduction if it fits the budget.
    if collapse_k and _footprint_bytes(tm, tl, K, itemsize, 1) <= _VMEM_TILE_BUDGET:
        tk = K
    else:
        tk = _pick_tile(K, max(min(tk, K), _LANE), _LANE)

    # Shrink (tk -> tl -> tm) until the double-buffered tile set fits the budget.
    while _footprint_bytes(tm, tl, tk, itemsize, K // tk) > _VMEM_TILE_BUDGET:
        new_tk = _pick_tile(K, tk // 2, _LANE)
        new_tl = _pick_tile(L, tl // 2, _LANE)
        new_tm = _pick_tile(Mp, tm // 2, sub_align)
        if new_tk < tk:
            tk = new_tk
        elif new_tl < tl:
            tl = new_tl
        elif new_tm < tm:
            tm = new_tm
        else:
            break  # nothing left to shrink; rely on vmem_limit_bytes

    ni, nj, nk = Mp // tm, L // tl, K // tk
    assert ni * tm == Mp and nj * tl == L and nk * tk == K, "tiles must divide dims"

    # v7x megacore: make sure the parallel axes expose >= 2 steps.
    if ni * nj == 1:
        new_tl = _pick_tile(L, tl // 2, _LANE)
        if new_tl < tl:
            tl, nj = new_tl, L // new_tl
        else:
            new_tm = _pick_tile(Mp, tm // 2, sub_align)
            if new_tm < tm:
                tm, ni = new_tm, Mp // new_tm

    # --- grid-axis order: keep the heavier operand un-restreamed -------------
    a_elems, b_elems, c_elems = Mp * K, K * L, Mp * L
    traffic_i_outer = a_elems * (nj if nk > 1 else 1) + b_elems * ni + c_elems
    traffic_j_outer = a_elems * nj + b_elems * (ni if nk > 1 else 1) + c_elems
    i_outer = traffic_i_outer <= traffic_j_outer

    if nk == 1:
        kernel = functools.partial(_mm_kernel_single, precision=precision)
        scratch = ()
        semantics = ("parallel", "parallel")
        if i_outer:
            grid = (ni, nj)
            a_map = lambda i, j: (i, 0)
            b_map = lambda i, j: (0, j)
            o_map = lambda i, j: (i, j)
        else:
            grid = (nj, ni)
            a_map = lambda j, i: (i, 0)
            b_map = lambda j, i: (0, j)
            o_map = lambda j, i: (i, j)
    else:
        kernel = functools.partial(_mm_kernel_acc, precision=precision)
        scratch = (pltpu.VMEM((tm, tl), jnp.float32),)
        semantics = ("parallel", "parallel", "arbitrary")
        if i_outer:
            grid = (ni, nj, nk)
            a_map = lambda i, j, k: (i, k)
            b_map = lambda i, j, k: (k, j)
            o_map = lambda i, j, k: (i, j)
        else:
            grid = (nj, ni, nk)
            a_map = lambda j, i, k: (i, k)
            b_map = lambda j, i, k: (k, j)
            o_map = lambda j, i, k: (i, j)

    cost = pl.CostEstimate(
        flops=2 * Mp * K * L,
        transcendentals=0,
        bytes_accessed=int((traffic_i_outer if i_outer else traffic_j_outer) * itemsize),
    )

    out2 = pl.pallas_call(
        kernel,
        out_shape=jax.ShapeDtypeStruct((Mp, L), A.dtype),
        grid_spec=pltpu.PrefetchScalarGridSpec(
            num_scalar_prefetch=0,
            grid=grid,
            in_specs=[
                pl.BlockSpec((tm, tk), a_map),
                pl.BlockSpec((tk, tl), b_map),
            ],
            out_specs=pl.BlockSpec((tm, tl), o_map),
            scratch_shapes=scratch,
        ),
        compiler_params=pltpu.CompilerParams(
            dimension_semantics=semantics,
            vmem_limit_bytes=_VMEM_LIMIT_BYTES,
        ),
        cost_estimate=cost,
    )(A2, B)

    return out2.reshape(N, M, L)


if __name__ == "__main__":
    key = jax.random.PRNGKey(0)
    kA, kB = jax.random.split(key)

    # Small shapes consistent with the module: A (N, M, K), B (K, L)
    N, M, K, L = 2, 16, 256, 256
    A = jax.random.normal(kA, (N, M, K), dtype=jnp.float32)
    B = jax.random.normal(kB, (K, L), dtype=jnp.float32)

    C = jax.block_until_ready(tensor_matmul(A, B))
    C_ref = jnp.einsum("nmk,kl->nml", A, B, precision=jax.lax.Precision.HIGHEST)
    assert C.shape == (N, M, L)
    assert jnp.allclose(C, C_ref, atol=2e-4, rtol=2e-4), "mismatch (single-k path)"

    # Exercise the multi-step reduction (accumulator) path as well.
    L2 = 384
    B2 = jax.random.normal(kB, (K, L2), dtype=jnp.float32)
    C2 = jax.block_until_ready(tensor_matmul(A, B2, tk=128, collapse_k=False))
    C2_ref = jnp.einsum("nmk,kl->nml", A, B2, precision=jax.lax.Precision.HIGHEST)
    assert C2.shape == (N, M, L2)
    assert jnp.allclose(C2, C2_ref, atol=2e-4, rtol=2e-4), "mismatch (acc path)"

    print("KERNEL_OK")
</pallas_src>

<mosaic_0001>
module attributes {stable_mosaic.version = 11 : i64} {
  func.func @_mm_kernel_single(%arg0: i32, %arg1: i32, %arg2: memref<32x256xf32, #tpu.memory_space<vmem>>, %arg3: memref<256x128xf32, #tpu.memory_space<vmem>>, %arg4: memref<32x128xf32, #tpu.memory_space<vmem>>) attributes {dimension_semantics = [#tpu.dimension_semantics<parallel>, #tpu.dimension_semantics<parallel>], iteration_bounds = array<i64: 1, 2>, scalar_prefetch = 0 : i64, scratch_operands = 0 : i64, tpu.core_type = #tpu.core_type<tc>, window_params = [{transform_indices = @transform_0, window_bounds = array<i64: 32, 256>}, {transform_indices = @transform_1, window_bounds = array<i64: 256, 128>}, {transform_indices = @transform_2, window_bounds = array<i64: 32, 128>}]} {
    %c0 = arith.constant 0 : index
    %c0_0 = arith.constant 0 : index
    %0 = vector.load %arg2[%c0, %c0_0] : memref<32x256xf32, #tpu.memory_space<vmem>>, vector<32x256xf32>
    %c0_1 = arith.constant 0 : index
    %c0_2 = arith.constant 0 : index
    %1 = vector.load %arg3[%c0_1, %c0_2] : memref<256x128xf32, #tpu.memory_space<vmem>>, vector<256x128xf32>
    %cst = arith.constant dense<0.000000e+00> : vector<32x128xf32>
    %2 = tpu.matmul %0, %1, %cst {dimension_numbers = #tpu.dot_dimension_numbers<[1], [0], [0], [1], [0, 0, 1, 1], [], []>, precision = #tpu.contract_precision<fp32>} : vector<32x256xf32>, vector<256x128xf32>, vector<32x128xf32> -> vector<32x128xf32>
    %c0_3 = arith.constant 0 : index
    %c0_4 = arith.constant 0 : index
    %3 = vector.load %arg4[%c0_3, %c0_4] : memref<32x128xf32, #tpu.memory_space<vmem>>, vector<32x128xf32>
    tpu.vector_store %arg4[%c0_3, %c0_4], %2 {strides = array<i32>} : memref<32x128xf32, #tpu.memory_space<vmem>>, vector<32x128xf32>,
    return
  }
  func.func @transform_0(%arg0: i32, %arg1: i32) -> (i32, i32) {
    %c0_i32 = arith.constant 0 : i32
    %c0_i32_0 = arith.constant 0 : i32
    return %arg0, %c0_i32 : i32, i32
  }
  func.func @transform_1(%arg0: i32, %arg1: i32) -> (i32, i32) {
    %c0_i32 = arith.constant 0 : i32
    %c0_i32_0 = arith.constant 0 : i32
    return %c0_i32, %arg1 : i32, i32
  }
  func.func @transform_2(%arg0: i32, %arg1: i32) -> (i32, i32) {
    %c0_i32 = arith.constant 0 : i32
    return %arg0, %arg1 : i32, i32
  }
}

</mosaic_0001>

<bundles_post_ra>
// kernel: tpu_custom_call.1
= control target key start
LH: loop header
LB: loop body
LE: loop exit
PB: predicated region body
PF: predicated region fallthrough
CT: control target
= control target key end

     0   :  { %7 = vsyncpa [#allocation3], 0  ;;  %s2288_s0 = inlined_call_operand.hbm [shape: f32[32,256], index: 0, kind: input, shape index: {}]   ;;  %s2289_s1 = inlined_call_operand.hbm [shape: f32[256,256], index: 1, kind: input, shape index: {}]   ;;  %s2290_s2 = inlined_call_operand.hbm [shape: f32[32,256], index: 2, kind: output, shape index: {}]  }
   0x1   :  { %8 = vsyncpa [#allocation6], 0 }
   0x2   :  { %10 = vsyncpa [#allocation6 + $0x1], 0 }
   0x3   :  { %11 = vsyncpa [#allocation4], 0 }
   0x4   :  { %13 = vsyncpa [#allocation4 + $0x1], 0  ;;  %s1498_s9 = smov 0   ;;  %s1500_s10 = smov 0  }
   0x5   :  { %s1502_s11 = smov 0   ;;  %s1504_s12 = smov 0  }
   0x6   :  { %s1506_s13 = smov 0   ;;  %s1508_s14 = smov 0  }
   0x7 LB: > { %s1232_s15 = sadd.s32 4294967295, %s1473_s14   ;;  %s1233_s16 = sadd.s32 4294967294, %s1473_s14   ;;  %s1473_s14 = sphi %s1508_s14, %s19_s14   ;;  %s1469_s13 = sphi %s1506_s13, %s2373_s13   ;;  %s1465_s12 = sphi %s1504_s12, %s2372_s12   ;;  %s1461_s11 = sphi %s1502_s11, %s2371_s11   ;;  %s1457_s10 = sphi %s1500_s10, %s2370_s10   ;;  %s1453_s9 = sphi %s1498_s9, %s2369_s9  }
   0x8   : > { %p77_p0 = scmp.ne.s32.totalorder %s1457_s10, %s1453_s9  ;;  %p1532_p1 = scmp.eq.s32.totalorder %s1232_s15, 0 }
   0x9   : > { %p1536_p2 = scmp.eq.s32.totalorder %s1232_s15, 1  ;;  %p109_p3 = scmp.eq.s32.totalorder %s1233_s16, 1 }
   0xa   : > { %p1542_p4 = por %p1532_p1, %p77_p0  ;;  %p1234_p5 = scmp.ge.s32.totalorder %s1473_s14, 1 }
   0xb   : > { %p1547_p6 = por %p109_p3, %p77_p0  ;;  %p116_p7 = scmp.lt.s32.totalorder %s1473_s14, 3 }
   0xc   : > { %s131_s23 = sshll.u32 %s2288_s0, 4  ;;  %s1475_s25 = smov [#allocation2]   ;;  %s132_s23 = int_to_ptr.hbm [resolvable:$true] %s131_s23 }
   0xd   : > { %p1555_p8 = pnand %p1234_p5, %p116_p7  ;;  %s133_s26 = sshll.u32 %s1475_s25, 4  ;;  %s134_s26 = int_to_ptr.vmem [resolvable:$true] %s133_s26 }
   0xe   : > { %p1236_p11 = scmp.ge.s32.totalorder %s1473_s14, 2  ;;  %s2291_s27 = smov 256  }
   0xf   : > { %p1255_p9 = pneg %p1555_p8  ;;  %s1477_s28 = smov 16  }
  0x10   : > { %s28_s29 = sadd.s32 1, %s1469_s13  ;;  %s64_s30 = sadd.s32 1, %s1461_s11 }
  0x11   : > { %p1256_p10 = pnand %p1255_p9, %p1532_p1  ;;  %p29_p12 = scmp.ge.s32.totalorder %s28_s29, 2 }
  0x12   : > { %p71_p13 = scmp.ne.s32.totalorder %s1461_s11, %s1457_s10  ;;  %p72_p0 = scmp.eq.s32.totalorder %s1473_s14, 0 }
  0x13   : > { %1258 = dma.hbm_to_vmem [thread:$0]  (!%p1256_p10), %s132_s23, 1024, %s134_s26, [#allocation3], %s2291_s27, %s2291_s27, %s1477_s28  }
  0x14   : > { %s2375_s29 = smov (%p29_p12, %s28_s29), 0  ;;  %p1573_p3 = por %p72_p0, %p71_p13 }
  0x15   : > { %p1579_p5 = por %p1536_p2, %p71_p13  ;;  %s61_s5 = ssub.s32 %s1469_s13, %s2375_s29 }
  0x16   : > { %p1268_p7 = scmp.lt.s32.totalorder %s1473_s14, 2  ;;  %p62_p9 = scmp.eq.s32.totalorder %s61_s5, 0 }
  0x17   : > { %s147_s6 = sand.u32 1, %s1461_s11   ;;  %s1238_s15 = sshll.u32 %s1469_s13, 3 }
  0x18   : > { %s1237_s7 = sshll.u32 %s147_s6, 8  ;;  %s155_s22 = scalar_lea.hbm %s2289_s1, %s1238_s15 }
  0x19   : > { %s1588_s8 = scalar_select %p62_p9, %s1461_s11, %s64_s30  }
  0x1a   : > { %s151_s23 = scalar_lea.vmem [#allocation5], %s1237_s7  ;;  %s156_s18 = sshll.u32 %s155_s22, 4  ;;  %s157_s18 = int_to_ptr.hbm [resolvable:$true] %s156_s18 }
  0x1b   : > { %s158_s25 = sshll.u32 %s151_s23, 4  ;;  %p1260_p2 = pnand %p1268_p7, %p1573_p3  ;;  %s159_s25 = int_to_ptr.vmem [resolvable:$true] %s158_s25 }
  0x1c   : > { %s148_s26 = scalar_lea.sflag [#allocation6], %s147_s6  ;;  %s1478_s28 = smov 128  }
  0x1d   : > { %s1479_s27 = smov 8   ;;  %s2324_s5 = smov 256  }
  0x1e   : > { %1262 = dma.hbm_to_vmem [thread:$0]  (!%p1260_p2), %s157_s18, 4096, %s159_s25, %s148_s26, %s2324_s5, %s1478_s28, %s1479_s27  }
  0x1f   : > { %170 = sbr.rel (%p1555_p8) target bundleno = 323 (0x143), region = 28 }
  0x24   : > { %1440 = dma.done.wait (%p1532_p1), [#allocation3], 1024  }
  0x25   : > { %1442 = vsyncadd (%p1532_p1), [#allocation3], 4294966272  ;;  %s1604_s30 = sand.u32 1, %s1457_s10  }
  0x26   : > { %s1241_s3 = sshll.u32 %s1604_s30, 8  ;;  %s178_s6 = scalar_lea.sflag [#allocation6], %s1604_s30 }
  0x27   : > { %s1608_s7 = scalar_lea.vmem [#allocation5], %s1241_s3 }
  0x28   : > { %1444 = dma.done.wait (%p1542_p4), %s178_s6, 4096  }
  0x29   : > { %1446 = vsyncadd (%p1542_p4), %s178_s6, 4294963200  ;;  %v228_v0 = vld [vmem:[%s1608_s7 + $0x78] sm:$0xff]  ;;  %v227_v1 = vld [vmem:[%s1608_s7 + $0x70] sm:$0xff]  ;;  %s1242_s17 = sshll.u32 %s1604_s30, 5  ;;  %s1244_s24 = sshll.u32 %s1465_s12, 3 }
  0x2a   : > { %v226_v2 = vld [vmem:[%s1608_s7 + $0x68] sm:$0xff]  ;;  %v1617_v3 = vand.u32 4294901760, %v228_v0  ;;  %v1619_v4 = vand.u32 4294901760, %v227_v1  ;;  %v225_v6 = vld [vmem:[%s1608_s7 + $0x60] sm:$0xff]  ;;  %v224_v7 = vld [vmem:[%s1608_s7 + $0x58] sm:$0xff]  ;;  %s2243_s19 = scalar_lea.vmem [#allocation7], %s1242_s17  ;;  %s1131_s16 = scalar_lea.hbm %s2290_s2, %s1244_s24 }
  0x2b   : > { %v1621_v5 = vand.u32 4294901760, %v226_v2  ;;  %v223_v8 = vld [vmem:[%s1608_s7 + $0x50] sm:$0xff]  ;;  %v1626_v9 = vand.u32 4294901760, %v225_v6  ;;  %v1628_v10 = vand.u32 4294901760, %v224_v7  ;;  %v222_v12 = vld [vmem:[%s1608_s7 + $0x48] sm:$0xff]  ;;  %v221_v13 = vld [vmem:[%s1608_s7 + $0x40] sm:$0xff] }
  0x2c   : > { %v1630_v11 = vand.u32 4294901760, %v223_v8  ;;  %246 = vmatpush.msra.mxu0 %v1617_v3  ;;  %v1636_v14 = vsub.f32 %v228_v0, %v1617_v3  ;;  %v1639_v15 = vsub.f32 %v227_v1, %v1619_v4  ;;  %493 = vmatpush.msra.mxu3 %v1617_v3  ;;  %v1645_v17 = vand.u32 4294901760, %v222_v12  ;;  %v220_v18 = vld [vmem:[%s1608_s7 + $0x38] sm:$0xff]  ;;  %v219_v29 = vld [vmem:[%s1608_s7 + $0x30] sm:$0xff]  ;;  %v218_v36 = vld [vmem:[%s1608_s7 + $0x28] sm:$0xff]  ;;  %s1132_s21 = sshll.u32 %s2243_s19, 4  ;;  %s1133_s21 = int_to_ptr.vmem [resolvable:$true] %s1132_s21 }
  0x2d   : > { %v1643_v16 = vsub.f32 %v226_v2, %v1621_v5  ;;  %v1649_v19 = vsub.f32 %v225_v6, %v1626_v9  ;;  %v1652_v20 = vsub.f32 %v224_v7, %v1628_v10  ;;  %v1654_v21 = vand.u32 4294901760, %v221_v13  ;;  %v217_v43 = vld [vmem:[%s1608_s7 + $0x20] sm:$0xff]  ;;  %v216_v49 = vld [vmem:[%s1608_s7 + $0x18] sm:$0xff]  ;;  %v215_v55 = vld [vmem:[%s1608_s7 + $0x10] sm:$0xff]  ;;  %s1134_s22 = sshll.u32 %s1131_s16, 4  ;;  %s1118_s12 = scalar_lea.sflag [#allocation4], %s1604_s30  ;;  %s1135_s22 = int_to_ptr.hbm [resolvable:$true] %s1134_s22 }
  0x2e   : > { %v1657_v22 = vsub.f32 %v223_v8, %v1630_v11  ;;  %248 = vmatpush.msra.mxu0 %v1619_v4  ;;  %425 = vmatpush.msra.mxu2 %v1636_v14  ;;  %v312_v23 = vand.u32 4294901760, %v1636_v14  ;;  %v2306_v24 = vand.u32 4294901760, %v1639_v15  ;;  %v1666_v27 = vand.u32 4294901760, %v220_v18  ;;  %v205_v56 = vld [vmem:[#allocation2] sm:$0xff]  ;;  %v214_v62 = vld [vmem:[%s1608_s7 + $0x8] sm:$0xff]  ;;  %v244_v6 = vld [vmem:[%s1608_s7 + $0xf8] sm:$0xff] }
  0x2f   : > { %v2304_v25 = vand.u32 4294901760, %v1643_v16  ;;  %495 = vmatpush.msra.mxu3 %v1619_v4  ;;  %v2302_v26 = vand.u32 4294901760, %v1649_v19  ;;  %v1669_v28 = vsub.f32 %v222_v12, %v1645_v17  ;;  %v2300_v33 = vand.u32 4294901760, %v1652_v20  ;;  %v213_v12 = vld [vmem:[%s1608_s7] sm:$0xff]  ;;  %s1401_s23 = sshra.s32 %s1135_s22, 4  ;;  %s1407_s28 = scalar_lea.hbm %s2290_s2, 64  ;;  %s1402_s23 = int_to_ptr.hbm [resolvable:$true] %s1401_s23 }
  0x30   : > { %250 = vmatpush.msra.mxu0 %v1621_v5  ;;  %428 = vmatpush.msra.mxu2 %v1639_v15  ;;  %v313_v30 = vsub.f32 %v1636_v14, %v312_v23  ;;  %v319_v31 = vsub.f32 %v1639_v15, %v2306_v24  ;;  %v2299_v34 = vand.u32 4294901760, %v1657_v22  ;;  %v1687_v35 = vsub.f32 %v221_v13, %v1654_v21  ;;  %v238_v24 = vld [vmem:[%s1608_s7 + $0xc8] sm:$0xff]  ;;  %s1403_s25 = scalar_lea.hbm %s1402_s23, 32  ;;  %p1408_p10 = scmp.lt.s32.totalorder %s1402_s23, %s2290_s2 }
  0x31   : > { %v325_v32 = vsub.f32 %v1643_v16, %v2304_v25  ;;  %497 = vmatpush.msra.mxu3 %v1621_v5  ;;  %v331_v39 = vsub.f32 %v1649_v19, %v2302_v26  ;;  %v1695_v40 = vand.u32 4294901760, %v219_v29  ;;  %v2298_v41 = vand.u32 4294901760, %v1669_v28  ;;  %p1404_p1 = scmp.ne.s32.totalorder %s1402_s23, %s1403_s25  ;;  %p1409_p12 = scmp.lt.s32.totalorder %s1407_s28, %s1403_s25 }
  0x32   : > { %252 = vmatpush.msra.mxu0 %v1626_v9  ;;  %v314_v37 = vand.u32 4294901760, %v313_v30  ;;  %431 = vmatpush.msra.mxu2 %v1643_v16  ;;  %v320_v38 = vand.u32 4294901760, %v319_v31  ;;  %v1700_v42 = vsub.f32 %v220_v18, %v1666_v27  ;;  %v337_v45 = vsub.f32 %v1652_v20, %v2300_v33  ;;  %v209_v33 = vld [vmem:[#allocation2 + $0x20] sm:$0xff] }
  0x33   : > { %499 = vmatpush.msra.mxu3 %v1626_v9  ;;  %v326_v44 = vand.u32 4294901760, %v325_v32  ;;  %v1707_v46 = vand.u32 4294901760, %v218_v36  ;;  %v343_v47 = vsub.f32 %v1657_v22, %v2299_v34  ;;  %v2296_v48 = vand.u32 4294901760, %v1687_v35  ;;  %p1405_p4 = pnand %p1404_p1, %p1579_p5  ;;  %p1410_p13 = por %p1409_p12, %p1408_p10 }
  0x34   : > { %254 = vmatpush.msra.mxu0 %v1628_v10  ;;  %315 = vmatpush.msra.mxu1 %v314_v37  ;;  %v332_v50 = vand.u32 4294901760, %v331_v39  ;;  %v1717_v51 = vand.u32 4294901760, %v217_v43  ;;  %v1720_v52 = vsub.f32 %v219_v29, %v1695_v40  ;;  %v349_v53 = vsub.f32 %v1669_v28, %v2298_v41 }
  0x35   : > { %434 = vmatpush.msra.mxu2 %v1649_v19  ;;  %501 = vmatpush.msra.mxu3 %v1628_v10  ;;  %v2295_v54 = vand.u32 4294901760, %v1700_v42  ;;  %v338_v57 = vand.u32 4294901760, %v337_v45  ;;  %v1730_v58 = vand.u32 4294901760, %v216_v49  ;;  %v1733_v59 = vsub.f32 %v218_v36, %v1707_v46  ;;  %v207_v36 = vld [vmem:[#allocation2 + $0x10] sm:$0xff]  ;;  %p1406_p8 = pneg %p1405_p4 }
  0x36   : > { %256 = vmatpush.msra.mxu0 %v1630_v11  ;;  %321 = vmatpush.msra.mxu1 %v320_v38  ;;  %v344_v60 = vand.u32 4294901760, %v343_v47  ;;  %v355_v61 = vsub.f32 %v1687_v35, %v2296_v48  ;;  %v1742_v63 = vand.u32 4294901760, %v215_v55  ;;  %v2294_v0 = vand.u32 4294901760, %v1720_v52 }
  0x37   : > { %437 = vmatpush.msra.mxu2 %v1652_v20  ;;  %503 = vmatpush.msra.mxu3 %v1630_v11  ;;  %v1746_v1 = vsub.f32 %v217_v43, %v1717_v51  ;;  %v1748_v2 = vand.u32 4294901760, %v205_v56  ;;  %v350_v7 = vand.u32 4294901760, %v349_v53  ;;  %v361_v8 = vsub.f32 %v1700_v42, %v2295_v54  ;;  %p1411_p0 = pnand %p1410_p13, %p1406_p8 }
  0x38   : > { %258 = vmatpush.msra.mxu0 %v1645_v17  ;;  %327 = vmatpush.msra.mxu1 %v326_v44  ;;  %v1758_v13 = vand.u32 4294901760, %v214_v62  ;;  %v2293_v18 = vand.u32 4294901760, %v1733_v59  ;;  %v1762_v29 = vsub.f32 %v216_v49, %v1730_v58  ;;  %v356_v31 = vand.u32 4294901760, %v355_v61  ;;  %v243_v44 = vld [vmem:[%s1608_s7 + $0xf0] sm:$0xff] }
  0x39   : > { %440 = vmatpush.msra.mxu2 %v1657_v22  ;;  %505 = vmatpush.msra.mxu3 %v1645_v17  ;;  %v1765_v30 = vsub.f32 %v205_v56, %v1748_v2  ;;  %v1769_v32 = vand.u32 4294901760, %v244_v6  ;;  %v367_v37 = vsub.f32 %v1720_v52, %v2294_v0  ;;  %v1775_v38 = vand.u32 4294901760, %v213_v12  ;;  %v242_v56 = vld [vmem:[%s1608_s7 + $0xe8] sm:$0xff] }
  0x3a   : > { %260 = vmatpush.msra.mxu0 %v1654_v21  ;;  %333 = vmatpush.msra.mxu1 %v332_v50  ;;  %v2292_v39 = vand.u32 4294901760, %v1746_v1  ;;  %v1779_v43 = vsub.f32 %v215_v55, %v1742_v63  ;;  %v362_v45 = vand.u32 4294901760, %v361_v8  ;;  %v373_v49 = vsub.f32 %v1733_v59, %v2293_v18 }
  0x3b   : > { %443 = vmatpush.msra.mxu2 %v1669_v28  ;;  %507 = vmatpush.msra.mxu3 %v1654_v21  ;;  %2325 = vst [vmem:[#allocation11_spill] sm:$0xff] %v1775_v38  ;;  %v2305_v47 = vand.u32 4294901760, %v1765_v30  ;;  %v2297_v50 = vand.u32 4294901760, %v1762_v29  ;;  %v1791_v53 = vsub.f32 %v214_v62, %v1758_v13  ;;  %v1793_v55 = vand.u32 4294901760, %v207_v36 }
  0x3c   : > { %262 = vmatpush.msra.mxu0 %v1666_v27  ;;  %339 = vmatpush.msra.mxu1 %v338_v57  ;;  %v1798_v57 = vand.u32 4294901760, %v243_v44  ;;  %v368_v61 = vand.u32 4294901760, %v367_v37  ;;  %v379_v62 = vsub.f32 %v1746_v1, %v2292_v39  ;;  %v1809_v8 = vsub.f32 %v213_v12, %v1775_v38  ;;  %v241_v37 = vld [vmem:[%s1608_s7 + $0xe0] sm:$0xff] }
  0x3d   : > { %446 = vmatpush.msra.mxu2 %v1687_v35  ;;  %509 = vmatpush.msra.mxu3 %v1666_v27  ;;  %v374_v39 = vand.u32 4294901760, %v373_v49  ;;  %v385_v12 = vsub.f32 %v1762_v29, %v2297_v50  ;;  %v2303_v18 = vand.u32 4294901760, %v1791_v53  ;;  %v1825_v0 = vsub.f32 %v207_v36, %v1793_v55 }
  0x3e   : > { %264 = vmatpush.msra.mxu0 %v1695_v40  ;;  %345 = vmatpush.msra.mxu1 %v344_v60  ;;  %v1801_v60 = vsub.f32 %v244_v6, %v1769_v32  ;;  %v280_v6 = vsub.f32 %v1765_v30, %v2305_v47  ;;  %v1831_v48 = vsub.f32 %v243_v44, %v1798_v57  ;;  %v380_v49 = vand.u32 4294901760, %v379_v62 }
  0x3f   : > { %449 = vmatpush.msra.mxu2 %v1700_v42  ;;  %511 = vmatpush.msra.mxu3 %v1695_v40  ;;  %v2308_v50 = vand.u32 4294901760, %v1809_v8  ;;  %v1839_v41 = vand.u32 4294901760, %v241_v37  ;;  %v397_v62 = vsub.f32 %v1791_v53, %v2303_v18  ;;  %v1867_v47 = vand.u32 4294901760, %v209_v33 }
  0x40   : > { %266 = vmatpush.msra.mxu0 %v1707_v46  ;;  %351 = vmatpush.msra.mxu1 %v350_v7  ;;  %v2301_v7 = vand.u32 4294901760, %v1779_v43  ;;  %v2307_v54 = vand.u32 4294901760, %v1801_v60  ;;  %v281_v34 = vand.u32 4294901760, %v280_v6  ;;  %v239_v6 = vld [vmem:[%s1608_s7 + $0xd0] sm:$0xff]  ;;  %v1887_v14 = vand.u32 4294901760, %v238_v24 }
  0x41   : > { %452 = vmatpush.msra.mxu2 %v1720_v52  ;;  %513 = vmatpush.msra.mxu3 %v1707_v46  ;;  %2326 = vst [vmem:[#allocation12_spill] sm:$0xff] %v1839_v41  ;;  %v403_v18 = vsub.f32 %v1809_v8, %v2308_v50  ;;  %v1865_v25 = vsub.f32 %v241_v37, %v1839_v41  ;;  %v2327_v50 = vand.u32 4294901760, %v1831_v48 }
  0x42   : > { %268 = vmatpush.msra.mxu0 %v1717_v51  ;;  %357 = vmatpush.msra.mxu1 %v356_v31  ;;  %v1816_v31 = vand.u32 4294901760, %v242_v56  ;;  %v391_v36 = vsub.f32 %v1779_v43, %v2301_v7  ;;  %v2309_v7 = vand.u32 4294901760, %v1825_v0 }
  0x43   : > { %455 = vmatpush.msra.mxu2 %v1733_v59  ;;  %515 = vmatpush.msra.mxu3 %v1717_v51 }
  0x44   : > { %270 = vmatpush.msra.mxu0 %v1730_v58  ;;  %363 = vmatpush.msra.mxu1 %v362_v45  ;;  %v240_v45 = vld [vmem:[%s1608_s7 + $0xd8] sm:$0xff]  ;;  %v1844_v44 = vsub.f32 %v242_v56, %v1816_v31  ;;  %v747_v56 = vsub.f32 %v1801_v60, %v2307_v54  ;;  %v288_v37 = vsub.f32 %v1825_v0, %v2309_v7  ;;  %v404_v7 = vand.u32 4294901760, %v403_v18 }
  0x45   : > { %458 = vmatpush.msra.mxu2 %v1746_v1  ;;  %517 = vmatpush.msra.mxu3 %v1730_v58  ;;  %v1851_v26 = vand.u32 4294901760, %v240_v45  ;;  %v1894_v54 = vsub.f32 %v209_v33, %v1867_v47 }
  0x46   : > { %272 = vmatpush.msra.mxu0 %v1742_v63  ;;  %369 = vmatpush.msra.mxu1 %v368_v61  ;;  %v386_v61 = vand.u32 4294901760, %v385_v12  ;;  %v392_v12 = vand.u32 4294901760, %v391_v36  ;;  %v289_v18 = vand.u32 4294901760, %v288_v37 }
  0x47   : > { %461 = vmatpush.msra.mxu2 %v1762_v29  ;;  %519 = vmatpush.msra.mxu3 %v1742_v63  ;;  %v1880_v36 = vsub.f32 %v240_v45, %v1851_v26  ;;  %v2311_v45 = vand.u32 4294901760, %v1865_v25 }
  0x48   : > { %274 = vmatpush.msra.mxu0 %v1758_v13  ;;  %375 = vmatpush.msra.mxu1 %v374_v39  ;;  %v1872_v39 = vand.u32 4294901760, %v239_v6 }
  0x49   : > { %464 = vmatpush.msra.mxu2 %v1779_v43  ;;  %521 = vmatpush.msra.mxu3 %v1758_v13 }
  0x4a   : > { %276 = vmatpush.msra.mxu0 %v1775_v38  ;;  %381 = vmatpush.msra.mxu1 %v380_v49  ;;  %v398_v49 = vand.u32 4294901760, %v397_v62  ;;  %v2328_v62 = vand.u32 4294901760, %v1639_v15  ;;  %v236_v15 = vld [vmem:[%s1608_s7 + $0xb8] sm:$0xff] }
  0x4b   : > { %282 = vmatmul.f32.vlgmr.msra.gmra.mxu0 %v281_v34  ;;  %467 = vmatpush.msra.mxu2 %v1791_v53  ;;  %v748_v34 = vand.u32 4294901760, %v747_v56  ;;  %v2329_v56 = vand.u32 4294901760, %v1765_v30  ;;  %v1920_v33 = vand.u32 4294901760, %v236_v15 }
  0x4c   : > { %387 = vmatpush.msra.mxu1 %v386_v61  ;;  %552 = vmatpush.msrb.mxu0 %v312_v23  ;;  %v753_v61 = vsub.f32 %v1831_v48, %v2327_v50  ;;  %v237_v23 = vld [vmem:[%s1608_s7 + $0xc0] sm:$0xff]  ;;  %v2330_v50 = vand.u32 4294901760, %v1844_v44 }
  0x4d   : > { %470 = vmatpush.msra.mxu2 %v1809_v8  ;;  %523 = vmatpush.msra.mxu3 %v1775_v38 }
  0x4e   : > { %393 = vmatpush.msra.mxu1 %v392_v12  ;;  %556 = vmatpush.msrb.mxu0 %v2328_v62  ;;  %v759_v38 = vsub.f32 %v1844_v44, %v2330_v50  ;;  %v1903_v12 = vsub.f32 %v239_v6, %v1872_v39  ;;  %v1908_v62 = vand.u32 4294901760, %v237_v23  ;;  %v1913_v50 = vsub.f32 %v238_v24, %v1887_v14  ;;  %v211_v6 = vld [vmem:[#allocation2 + $0x30] sm:$0xff] }
  0x4f   : > { %473 = vmatmul.f32.vlgmr.msra.gmra.mxu2 %v1765_v30  ;;  %527 = vmatmul.f32.vlgmr.msra.gmra.mxu3 %v2329_v56  ;;  %v2331_v30 = vand.u32 4294901760, %v1643_v16  ;;  %v754_v56 = vand.u32 4294901760, %v753_v61  ;;  %v235_v16 = vld [vmem:[%s1608_s7 + $0xb0] sm:$0xff]  ;;  %v1934_v37 = vand.u32 4294901760, %v211_v6  ;;  %v1948_v61 = vsub.f32 %v236_v15, %v1920_v33 }
  0x50   : > { %680 = vmatpush.msrb.mxu2 %v1769_v32  ;;  %399 = vmatpush.msra.mxu1 %v398_v49  ;;  %v765_v49 = vsub.f32 %v1865_v25, %v2311_v45  ;;  %v760_v24 = vand.u32 4294901760, %v759_v38  ;;  %v1932_v45 = vsub.f32 %v237_v23, %v1908_v62  ;;  %v2335_v23 = vand.u32 4294901760, %v1894_v54 }
  0x51   : > { %560 = vmatpush.msrb.mxu0 %v2331_v30  ;;  %749 = vmatpush.msrb.mxu3 %v748_v34  ;;  %v2332_v34 = vand.u32 4294901760, %v1649_v19  ;;  %v234_v19 = vld [vmem:[%s1608_s7 + $0xa8] sm:$0xff]  ;;  %v1962_v15 = vsub.f32 %v211_v6, %v1934_v37  ;;  %v2314_v6 = vand.u32 4294901760, %v1948_v61 }
  0x52   : > { %682 = vmatpush.msrb.mxu2 %v1798_v57  ;;  %405 = vmatpush.msra.mxu1 %v404_v7  ;;  %v2333_v7 = vand.u32 4294901760, %v1880_v36 }
  0x53   : > { %564 = vmatpush.msrb.mxu0 %v2332_v34  ;;  %407 = vmatmul.f32.vlgmr.msra.gmra.mxu1 %v1748_v2  ;;  %v1939_v34 = vand.u32 4294901760, %v235_v16 }
  0x54   : > { %290 = vmatmul.f32.gmra.mxu0 %v289_v18  ;;  %631 = vmatpush.msrb.mxu1 %v1617_v3  ;;  %v771_v30 = vsub.f32 %v1880_v36, %v2333_v7  ;;  %v2334_v3 = vand.u32 4294901760, %v1652_v20  ;;  %v766_v18 = vand.u32 4294901760, %v765_v49  ;;  %v296_v7 = vsub.f32 %v1894_v54, %v2335_v23 }
  0x55   : > { %684 = vmatpush.msrb.mxu2 %v1816_v31  ;;  %755 = vmatpush.msrb.mxu3 %v754_v56  ;;  %v2336_v56 = vand.u32 4294901760, %v1903_v12  ;;  %v1954_v20 = vand.u32 4294901760, %v234_v19 }
  0x56   : > { %568 = vmatpush.msrb.mxu0 %v2334_v3  ;;  %633 = vmatpush.msrb.mxu1 %v1619_v4  ;;  %v233_v3 = vld [vmem:[%s1608_s7 + $0xa0] sm:$0xff]  ;;  %v2337_v4 = vand.u32 4294901760, %v1657_v22  ;;  %v772_v49 = vand.u32 4294901760, %v771_v30  ;;  %v232_v22 = vld [vmem:[%s1608_s7 + $0x98] sm:$0xff]  ;;  %v2339_v30 = vand.u32 4294901760, %v1669_v28  ;;  %v2341_v28 = vand.u32 4294901760, %v1932_v45 }
  0x57   : > { %686 = vmatpush.msrb.mxu2 %v1839_v41  ;;  %761 = vmatpush.msrb.mxu3 %v760_v24  ;;  %v777_v38 = vsub.f32 %v1903_v12, %v2336_v56  ;;  %v2338_v24 = vand.u32 4294901760, %v1913_v50  ;;  %v1970_v41 = vsub.f32 %v235_v16, %v1939_v34  ;;  %v1976_v23 = vand.u32 4294901760, %v233_v3 }
  0x58   : > { %572 = vmatpush.msrb.mxu0 %v2337_v4  ;;  %478 = vmatmul.f32.gmra.mxu2 %v1825_v0  ;;  %v297_v4 = vand.u32 4294901760, %v296_v7  ;;  %v1982_v16 = vsub.f32 %v234_v19, %v1954_v20  ;;  %v2315_v7 = vand.u32 4294901760, %v1962_v15  ;;  %v206_v19 = vld [vmem:[#allocation2 + $0x8] sm:$0xff] }
  0x59   : > { %635 = vmatpush.msrb.mxu1 %v1621_v5  ;;  %688 = vmatpush.msrb.mxu2 %v1851_v26  ;;  %v783_v56 = vsub.f32 %v1913_v50, %v2338_v24  ;;  %v2340_v5 = vand.u32 4294901760, %v1825_v0  ;;  %v778_v24 = vand.u32 4294901760, %v777_v38  ;;  %v231_v0 = vld [vmem:[%s1608_s7 + $0x90] sm:$0xff]  ;;  %v795_v38 = vsub.f32 %v1948_v61, %v2314_v6  ;;  %v229_v6 = vld [vmem:[%s1608_s7 + $0x80] sm:$0xff] }
  0x5a   : > { %767 = vmatpush.msrb.mxu3 %v766_v18  ;;  %576 = vmatpush.msrb.mxu0 %v2339_v30  ;;  %v789_v18 = vsub.f32 %v1932_v45, %v2341_v28  ;;  %v1989_v30 = vand.u32 4294901760, %v232_v22  ;;  %v230_v28 = vld [vmem:[%s1608_s7 + $0x88] sm:$0xff] }
  0x5b   : > { %533 = vmatmul.f32.gmra.mxu3 %v2340_v5  ;;  %637 = vmatpush.msrb.mxu1 %v1626_v9  ;;  %v2342_v5 = vand.u32 4294901760, %v1687_v35  ;;  %v784_v9 = vand.u32 4294901760, %v783_v56  ;;  %v2316_v35 = vand.u32 4294901760, %v1982_v16  ;;  %v2006_v56 = vand.u32 4294901760, %v231_v0 }
  0x5c   : > { %690 = vmatpush.msrb.mxu2 %v1872_v39  ;;  %773 = vmatpush.msrb.mxu3 %v772_v49  ;;  %v2001_v49 = vsub.f32 %v233_v3, %v1976_v23  ;;  %v2015_v3 = vsub.f32 %v232_v22, %v1989_v30  ;;  %v2347_v22 = vand.u32 4294901760, %v1894_v54 }
  0x5d   : > { %580 = vmatpush.msrb.mxu0 %v2342_v5  ;;  %411 = vmatmul.f32.gmra.mxu1 %v1793_v55  ;;  %v2343_v5 = vand.u32 4294901760, %v1700_v42 }
  0x5e   : > { %298 = vmatmul.f32.gmra.mxu0 %v297_v4  ;;  %639 = vmatpush.msrb.mxu1 %v1628_v10  ;;  %v790_v10 = vand.u32 4294901760, %v789_v18  ;;  %v304_v4 = vsub.f32 %v1962_v15, %v2315_v7  ;;  %v796_v18 = vand.u32 4294901760, %v795_v38  ;;  %v2036_v7 = vand.u32 4294901760, %v229_v6 }
  0x5f   : > { %692 = vmatpush.msrb.mxu2 %v1887_v14  ;;  %779 = vmatpush.msrb.mxu3 %v778_v24  ;;  %v2344_v24 = vand.u32 4294901760, %v1970_v41  ;;  %v2346_v38 = vand.u32 4294901760, %v1733_v59 }
  0x60   : > { %584 = vmatpush.msrb.mxu0 %v2343_v5  ;;  %641 = vmatpush.msrb.mxu1 %v1630_v11  ;;  %v2022_v5 = vand.u32 4294901760, %v230_v28  ;;  %v2345_v11 = vand.u32 4294901760, %v1720_v52  ;;  %v2038_v52 = vand.u32 4294901760, %v206_v19 }
  0x61   : > { %694 = vmatpush.msrb.mxu2 %v1908_v62  ;;  %785 = vmatpush.msrb.mxu3 %v784_v9  ;;  %v801_v42 = vsub.f32 %v1970_v41, %v2344_v24  ;;  %v807_v9 = vsub.f32 %v1982_v16, %v2316_v35  ;;  %v2034_v24 = vsub.f32 %v231_v0, %v2006_v56 }
  0x62   : > { %588 = vmatpush.msrb.mxu0 %v2345_v11  ;;  %483 = vmatmul.f32.gmra.mxu2 %v1894_v54  ;;  %v305_v11 = vand.u32 4294901760, %v304_v4  ;;  %v2047_v0 = vsub.f32 %v230_v28, %v2022_v5  ;;  %v2349_v4 = vand.u32 4294901760, %v1746_v1  ;;  %v2061_v28 = vsub.f32 %v229_v6, %v2036_v7 }
  0x63   : > { %643 = vmatpush.msrb.mxu1 %v1645_v17  ;;  %696 = vmatpush.msrb.mxu2 %v1920_v33  ;;  %v818_v17 = vand.u32 4294901760, %v2015_v3  ;;  %v802_v35 = vand.u32 4294901760, %v801_v42  ;;  %v808_v54 = vand.u32 4294901760, %v807_v9  ;;  %v2350_v9 = vand.u32 4294901760, %v1762_v29 }
  0x64   : > { %791 = vmatpush.msrb.mxu3 %v790_v10  ;;  %592 = vmatpush.msrb.mxu0 %v2346_v38  ;;  %v2348_v10 = vand.u32 4294901760, %v2001_v49  ;;  %v830_v1 = vand.u32 4294901760, %v2047_v0  ;;  %v2351_v38 = vand.u32 4294901760, %v1779_v43  ;;  %v2353_v43 = vand.u32 4294901760, %v1962_v15 }
  0x65   : > { %539 = vmatmul.f32.gmra.mxu3 %v2347_v22  ;;  %645 = vmatpush.msrb.mxu1 %v1654_v21  ;;  %v824_v22 = vand.u32 4294901760, %v2034_v24  ;;  %v2058_v21 = vsub.f32 %v206_v19, %v2038_v52  ;;  %v819_v42 = vsub.f32 %v2015_v3, %v818_v17 }
  0x66   : > { %698 = vmatpush.msrb.mxu2 %v1939_v34  ;;  %797 = vmatpush.msrb.mxu3 %v796_v18  ;;  %v813_v59 = vsub.f32 %v2001_v49, %v2348_v10  ;;  %v208_v18 = vld [vmem:[#allocation2 + $0x18] sm:$0xff]  ;;  %v2352_v10 = vand.u32 4294901760, %v1791_v53 }
  0x67   : > { %596 = vmatpush.msrb.mxu0 %v2349_v4  ;;  %415 = vmatmul.f32.gmra.mxu1 %v1867_v47  ;;  %v713_v19 = vand.u32 4294901760, %v2058_v21  ;;  %v820_v29 = vand.u32 4294901760, %v819_v42 }
  0x68   : > { %306 = vmatmul.f32.gmra.mxu0 %v305_v11  ;;  %647 = vmatpush.msrb.mxu1 %v1666_v27  ;;  %v814_v6 = vand.u32 4294901760, %v813_v59  ;;  %v825_v27 = vsub.f32 %v2034_v24, %v824_v22  ;;  %v2081_v11 = vand.u32 4294901760, %v208_v18 }
  0x69   : > { %700 = vmatpush.msrb.mxu2 %v1954_v20  ;;  %803 = vmatpush.msrb.mxu3 %v802_v35  ;;  %v836_v35 = vand.u32 4294901760, %v2061_v28 }
  0x6a   : > { %600 = vmatpush.msrb.mxu0 %v2350_v9  ;;  %649 = vmatpush.msrb.mxu1 %v1695_v40  ;;  %v831_v40 = vsub.f32 %v2047_v0, %v830_v1  ;;  %v826_v59 = vand.u32 4294901760, %v825_v27  ;;  %v2101_v53 = vsub.f32 %v208_v18, %v2081_v11  ;;  %v210_v9 = vld [vmem:[#allocation2 + $0x28] sm:$0xff]  ;;  %v2355_v18 = vand.u32 4294901760, %v1801_v60 }
  0x6b   : > { %702 = vmatpush.msrb.mxu2 %v1976_v23  ;;  %809 = vmatpush.msrb.mxu3 %v808_v54  ;;  %v837_v4 = vsub.f32 %v2061_v28, %v836_v35  ;;  %v2357_v27 = vand.u32 4294901760, %v1831_v48 }
  0x6c   : > { %604 = vmatpush.msrb.mxu0 %v2351_v38  ;;  %488 = vmatmul.f32.gmra.mxu2 %v1962_v15  ;;  %v2354_v15 = vand.u32 4294901760, %v1809_v8  ;;  %v721_v8 = vand.u32 4294901760, %v2101_v53  ;;  %v2358_v38 = vand.u32 4294901760, %v1844_v44 }
  0x6d   : > { %651 = vmatpush.msrb.mxu1 %v1707_v46  ;;  %704 = vmatpush.msrb.mxu2 %v1989_v30  ;;  %v714_v46 = vsub.f32 %v2058_v21, %v713_v19  ;;  %v838_v42 = vand.u32 4294901760, %v837_v4 }
  0x6e   : > { %815 = vmatpush.msrb.mxu3 %v814_v6  ;;  %608 = vmatpush.msrb.mxu0 %v2352_v10  ;;  %v2356_v6 = vld [vmem:[#allocation11_spill] sm:$0xff]  ;;  %v2363_v10 = vand.u32 4294901760, %v1913_v50 }
  0x6f   : > { %545 = vmatmul.f32.gmra.mxu3 %v2353_v43  ;;  %653 = vmatpush.msrb.mxu1 %v1717_v51  ;;  %v832_v51 = vand.u32 4294901760, %v831_v40  ;;  %v715_v54 = vand.u32 4294901760, %v714_v46  ;;  %v2359_v40 = vand.u32 4294901760, %v1865_v25  ;;  %v2364_v43 = vand.u32 4294901760, %v1932_v45 }
  0x70   : > { %706 = vmatpush.msrb.mxu2 %v2006_v56  ;;  %821 = vmatpush.msrb.mxu3 %v820_v29 }
  0x71   : > { %612 = vmatpush.msrb.mxu0 %v2354_v15  ;;  %419 = vmatmul.f32.gmra.mxu1 %v1934_v37 }
  0x72   : > { %614 = vmatmul.f32.vlgmr.msrb.gmra.mxu0 %v1748_v2  ;;  %655 = vmatpush.msrb.mxu1 %v1730_v58  ;;  %v2115_v58 = vand.u32 4294901760, %v210_v9 }
  0x73   : > { %708 = vmatpush.msrb.mxu2 %v2022_v5  ;;  %827 = vmatpush.msrb.mxu3 %v826_v59 }
  0x74   : > { %859 = vmatpush.msra.mxu0 %v1801_v60  ;;  %657 = vmatpush.msrb.mxu1 %v1742_v63  ;;  %v722_v63 = vsub.f32 %v2101_v53, %v721_v8 }
  0x75   : > { %710 = vmatpush.msrb.mxu2 %v2036_v7  ;;  %833 = vmatpush.msrb.mxu3 %v832_v51 }
  0x76   : > { %862 = vmatpush.msra.mxu0 %v1831_v48  ;;  %659 = vmatpush.msrb.mxu1 %v1758_v13  ;;  %v2129_v13 = vsub.f32 %v210_v9, %v2115_v58  ;;  %v723_v60 = vand.u32 4294901760, %v722_v63  ;;  %v212_v48 = vld [vmem:[#allocation2 + $0x38] sm:$0xff] }
  0x77   : > { %716 = vmatmul.f32.vlgmr.msrb.gmra.mxu2 %v715_v54  ;;  %839 = vmatpush.msrb.mxu3 %v838_v42 }
  0x78   : > { %986 = vmatpush.msra.mxu2 %v2355_v18  ;;  %865 = vmatpush.msra.mxu0 %v1844_v44  ;;  %v729_v29 = vand.u32 4294901760, %v2129_v13  ;;  %v2361_v44 = vld [vmem:[#allocation12_spill] sm:$0xff] }
  0x79   : > { %661 = vmatpush.msrb.mxu1 %v2356_v6  ;;  %841 = vmatmul.f32.vlgmr.msrb.gmra.mxu3 %v2038_v52 }
  0x7a   : > { %990 = vmatpush.msra.mxu2 %v2357_v27  ;;  %1065 = vmatpush.msra.mxu3 %v1769_v32 }
  0x7b   : > { %868 = vmatpush.msra.mxu0 %v1865_v25  ;;  %663 = vmatmul.f32.vlgmr.msrb.gmra.mxu1 %v1748_v2  ;;  %v2145_v2 = vand.u32 4294901760, %v212_v48  ;;  %v730_v25 = vsub.f32 %v2129_v13, %v729_v29 }
  0x7c   : > { %618 = vmatmul.f32.gmra.mxu0 %v1793_v55  ;;  %927 = vmatpush.msra.mxu1 %v1769_v32  ;;  %v2360_v32 = vand.u32 4294901760, %v1880_v36 }
  0x7d   : > { %994 = vmatpush.msra.mxu2 %v2358_v38  ;;  %1067 = vmatpush.msra.mxu3 %v1798_v57 }
  0x7e   : > { %871 = vmatpush.msra.mxu0 %v1880_v36  ;;  %929 = vmatpush.msra.mxu1 %v1798_v57  ;;  %v2362_v57 = vand.u32 4294901760, %v1903_v12  ;;  %v731_v36 = vand.u32 4294901760, %v730_v25 }
  0x7f   : > { %998 = vmatpush.msra.mxu2 %v2359_v40  ;;  %1069 = vmatpush.msra.mxu3 %v1816_v31 }
  0x80   : > { %874 = vmatpush.msra.mxu0 %v1903_v12  ;;  %724 = vmatmul.f32.gmra.mxu2 %v723_v60 }
  0x81   : > { %931 = vmatpush.msra.mxu1 %v1816_v31  ;;  %1002 = vmatpush.msra.mxu2 %v2360_v32  ;;  %v2161_v31 = vsub.f32 %v212_v48, %v2145_v2 }
  0x82   : > { %1071 = vmatpush.msra.mxu3 %v2361_v44  ;;  %877 = vmatpush.msra.mxu0 %v1913_v50 }
  0x83   : > { %845 = vmatmul.f32.gmra.mxu3 %v2081_v11  ;;  %933 = vmatpush.msra.mxu1 %v2361_v44  ;;  %v737_v12 = vand.u32 4294901760, %v2161_v31 }
  0x84   : > { %1006 = vmatpush.msra.mxu2 %v2362_v57  ;;  %1073 = vmatpush.msra.mxu3 %v1851_v26 }
  0x85   : > { %880 = vmatpush.msra.mxu0 %v1932_v45  ;;  %667 = vmatmul.f32.gmra.mxu1 %v1793_v55  ;;  %v738_v55 = vsub.f32 %v2161_v31, %v737_v12  ;;  %v2367_v45 = vand.u32 4294901760, %v1982_v16 }
  0x86   : > { %622 = vmatmul.f32.gmra.mxu0 %v1867_v47  ;;  %935 = vmatpush.msra.mxu1 %v1851_v26  ;;  %v2365_v26 = vand.u32 4294901760, %v1948_v61 }
  0x87   : > { %1010 = vmatpush.msra.mxu2 %v2363_v10  ;;  %1075 = vmatpush.msra.mxu3 %v1872_v39 }
  0x88   : > { %883 = vmatpush.msra.mxu0 %v1948_v61  ;;  %937 = vmatpush.msra.mxu1 %v1872_v39  ;;  %v2366_v39 = vand.u32 4294901760, %v1970_v41 }
  0x89   : > { %1014 = vmatpush.msra.mxu2 %v2364_v43  ;;  %1077 = vmatpush.msra.mxu3 %v1887_v14 }
  0x8a   : > { %886 = vmatpush.msra.mxu0 %v1970_v41  ;;  %732 = vmatmul.f32.gmra.mxu2 %v731_v36  ;;  %v2368_v41 = vand.u32 4294901760, %v2001_v49 }
  0x8b   : > { %939 = vmatpush.msra.mxu1 %v1887_v14  ;;  %1018 = vmatpush.msra.mxu2 %v2365_v26  ;;  %v739_v14 = vand.u32 4294901760, %v738_v55 }
  0x8c   : > { %1079 = vmatpush.msra.mxu3 %v1908_v62  ;;  %889 = vmatpush.msra.mxu0 %v1982_v16 }
  0x8d   : > { %849 = vmatmul.f32.gmra.mxu3 %v2115_v58  ;;  %941 = vmatpush.msra.mxu1 %v1908_v62 }
  0x8e   : > { %1022 = vmatpush.msra.mxu2 %v2366_v39  ;;  %1081 = vmatpush.msra.mxu3 %v1920_v33 }
  0x8f   : > { %892 = vmatpush.msra.mxu0 %v2001_v49  ;;  %671 = vmatmul.f32.gmra.mxu1 %v1867_v47 }
  0x90   : > { %626 = vmatmul.f32.gmra.mxu0 %v1934_v37  ;;  %943 = vmatpush.msra.mxu1 %v1920_v33 }
  0x91   : > { %1026 = vmatpush.msra.mxu2 %v2367_v45  ;;  %1083 = vmatpush.msra.mxu3 %v1939_v34 }
  0x92   : > { %895 = vmatpush.msra.mxu0 %v2015_v3  ;;  %945 = vmatpush.msra.mxu1 %v1939_v34 }
  0x93   : > { %1030 = vmatpush.msra.mxu2 %v2368_v41  ;;  %1085 = vmatpush.msra.mxu3 %v1954_v20 }
  0x94   : > { %898 = vmatpush.msra.mxu0 %v2034_v24  ;;  %740 = vmatmul.f32.gmra.mxu2 %v739_v14 }
  0x95   : > { %947 = vmatpush.msra.mxu1 %v1954_v20  ;;  %1034 = vmatpush.msra.mxu2 %v818_v17 }
  0x96   : > { %1087 = vmatpush.msra.mxu3 %v1976_v23  ;;  %901 = vmatpush.msra.mxu0 %v2047_v0 }
  0x97   : > { %853 = vmatmul.f32.gmra.mxu3 %v2145_v2  ;;  %949 = vmatpush.msra.mxu1 %v1976_v23 }
  0x98   : > { %1038 = vmatpush.msra.mxu2 %v824_v22  ;;  %1089 = vmatpush.msra.mxu3 %v1989_v30 }
  0x99   : > { %904 = vmatpush.msra.mxu0 %v2061_v28  ;;  %675 = vmatmul.f32.gmra.mxu1 %v1934_v37 }
  0x9a   : > { %907 = vmatmul.f32.vlgmr.msra.gmra.mxu0 %v2058_v21  ;;  %951 = vmatpush.msra.mxu1 %v1989_v30 }
  0x9b   : > { %1042 = vmatpush.msra.mxu2 %v830_v1  ;;  %1091 = vmatpush.msra.mxu3 %v2006_v56 }
  0x9c   : > { %953 = vmatpush.msra.mxu1 %v2006_v56 }
  0x9d   : > { %1046 = vmatpush.msra.mxu2 %v836_v35  ;;  %1093 = vmatpush.msra.mxu3 %v2022_v5 }
  0x9e   : > { %955 = vmatpush.msra.mxu1 %v2022_v5  ;;  %1048 = vmatmul.f32.vlgmr.msra.gmra.mxu2 %v2038_v52 }
  0x9f   : > { %1095 = vmatpush.msra.mxu3 %v2036_v7 }
  0xa0   : > { %957 = vmatpush.msra.mxu1 %v2036_v7  ;;  %1097 = vmatmul.f32.vlgmr.msra.gmra.mxu3 %v2038_v52 }
  0xa1   : > { %961 = vmatmul.f32.vlgmr.msra.gmra.mxu1 %v713_v19 }
  0xa2   : > { %912 = vmatmul.f32.gmra.mxu0 %v2101_v53 }
  0xa6   : > { %1052 = vmatmul.f32.gmra.mxu2 %v2081_v11 }
  0xa8   : > { %1101 = vmatmul.f32.gmra.mxu3 %v2081_v11 }
  0xa9   : > { %967 = vmatmul.f32.gmra.mxu1 %v721_v8 }
  0xaa   : > { %917 = vmatmul.f32.gmra.mxu0 %v2129_v13 }
  0xae   : > { %1056 = vmatmul.f32.gmra.mxu2 %v2115_v58 }
  0xb0   : > { %1105 = vmatmul.f32.gmra.mxu3 %v2115_v58 }
  0xb1   : > { %973 = vmatmul.f32.gmra.mxu1 %v729_v29 }
  0xb2   : > { %922 = vmatmul.f32.gmra.mxu0 %v2161_v31 }
  0xb6   : > { %1060 = vmatmul.f32.gmra.mxu2 %v2145_v2 }
  0xb8   : > { %1109 = vmatmul.f32.gmra.mxu3 %v2145_v2 }
  0xb9   : > { %979 = vmatmul.f32.gmra.mxu1 %v737_v12 }
  0xc8   : > { %v283_v47 = vpop.f32.mrf.mxu0 }
  0xd0   : > { %v408_v33 = vpop.f32.mrf.mxu1 }
  0xd1   : > { %v291_v62 = vpop.f32.mrf.mxu0  ;;  %v409_v35 = vadd.f32 %v408_v33, %v283_v47 }
  0xd2   : > { %v474_v50 = vpop.f32.mrf.mxu2  ;;  %v528_v37 = vpop.f32.mrf.mxu3 }
  0xd3   : > { %v475_v11 = vadd.f32 %v474_v50, %v409_v35 }
  0xd5   : > { %v529_v53 = vadd.f32 %v528_v37, %v475_v11 }
  0xda   : > { %v412_v61 = vpop.f32.mrf.mxu1 }
  0xdb   : > { %v299_v34 = vpop.f32.mrf.mxu0  ;;  %v479_v20 = vpop.f32.mrf.mxu2  ;;  %v413_v15 = vadd.f32 %v412_v61, %v291_v62 }
  0xdd   : > { %v480_v42 = vadd.f32 %v479_v20, %v413_v15 }
  0xde   : > { %v534_v23 = vpop.f32.mrf.mxu3 }
  0xdf   : > { %v535_v58 = vadd.f32 %v534_v23, %v480_v42 }
  0xe4   : > { %v416_v16 = vpop.f32.mrf.mxu1 }
  0xe5   : > { %v307_v7 = vpop.f32.mrf.mxu0  ;;  %v484_v30 = vpop.f32.mrf.mxu2  ;;  %v417_v18 = vadd.f32 %v416_v16, %v299_v34 }
  0xe7   : > { %v485_v38 = vadd.f32 %v484_v30, %v417_v18 }
  0xe8   : > { %v540_v49 = vpop.f32.mrf.mxu3 }
  0xe9   : > { %v541_v32 = vadd.f32 %v540_v49, %v485_v38 }
  0xee   : > { %v420_v56 = vpop.f32.mrf.mxu1 }
  0xef   : > { %v615_v3 = vpop.f32.mrf.mxu0  ;;  %v489_v5 = vpop.f32.mrf.mxu2  ;;  %v421_v44 = vadd.f32 %v420_v56, %v307_v7 }
  0xf0   : > { %v616_v54 = vadd.f32 %v615_v3, %v529_v53 }
  0xf1   : > { %v490_v43 = vadd.f32 %v489_v5, %v421_v44 }
  0xf2   : > { %v546_v24 = vpop.f32.mrf.mxu3 }
  0xf3   : > { %v547_v47 = vadd.f32 %v546_v24, %v490_v43 }
  0xf8   : > { %v664_v52 = vpop.f32.mrf.mxu1 }
  0xf9   : > { %v619_v17 = vpop.f32.mrf.mxu0  ;;  %v665_v9 = vadd.f32 %v664_v52, %v616_v54 }
  0xfa   : > { %v717_v0 = vpop.f32.mrf.mxu2  ;;  %v620_v13 = vadd.f32 %v619_v17, %v535_v58 }
  0xfb   : > { %v718_v63 = vadd.f32 %v717_v0, %v665_v9 }
  0xfc   : > { %v842_v22 = vpop.f32.mrf.mxu3 }
  0xfd   : > { %v843_v48 = vadd.f32 %v842_v22, %v718_v63 }
 0x102   : > { %v668_v21 = vpop.f32.mrf.mxu1 }
 0x103   : > { %v623_v28 = vpop.f32.mrf.mxu0  ;;  %v725_v1 = vpop.f32.mrf.mxu2  ;;  %v669_v29 = vadd.f32 %v668_v21, %v620_v13 }
 0x104   : > { %v624_v36 = vadd.f32 %v623_v28, %v541_v32 }
 0x105   : > { %v726_v25 = vadd.f32 %v725_v1, %v669_v29 }
 0x106   : > { %v846_v19 = vpop.f32.mrf.mxu3 }
 0x107   : > { %v847_v26 = vadd.f32 %v846_v19, %v726_v25 }
 0x10c   : > { %v672_v59 = vpop.f32.mrf.mxu1 }
 0x10d   : > { %v627_v46 = vpop.f32.mrf.mxu0  ;;  %v733_v4 = vpop.f32.mrf.mxu2  ;;  %v673_v55 = vadd.f32 %v672_v59, %v624_v36 }
 0x10e   : > { %v628_v37 = vadd.f32 %v627_v46, %v547_v47 }
 0x10f   : > { %v734_v33 = vadd.f32 %v733_v4, %v673_v55 }
 0x110   : > { %v850_v51 = vpop.f32.mrf.mxu3 }
 0x111   : > { %v851_v20 = vadd.f32 %v850_v51, %v734_v33 }
 0x116   : > { %v676_v8 = vpop.f32.mrf.mxu1 }
 0x117   : > { %v908_v6 = vpop.f32.mrf.mxu0  ;;  %v741_v27 = vpop.f32.mrf.mxu2  ;;  %v677_v23 = vadd.f32 %v676_v8, %v628_v37 }
 0x118   : > { %v909_v40 = vadd.f32 %v908_v6, %v843_v48 }
 0x119   : > { %v742_v56 = vadd.f32 %v741_v27, %v677_v23 }
 0x11a   : > { %v854_v60 = vpop.f32.mrf.mxu3 }
 0x11b   : > { %v855_v17 = vadd.f32 %v854_v60, %v742_v56 }
 0x11e   : > { %v962_v2 = vpop.f32.mrf.mxu1 }
 0x11f   : > { %v913_v57 = vpop.f32.mrf.mxu0  ;;  %v963_v31 = vadd.f32 %v962_v2, %v909_v40 }
 0x120   : > { %v914_v45 = vadd.f32 %v913_v57, %v847_v26 }
 0x121   : > { %v1049_v10 = vpop.f32.mrf.mxu2 }
 0x122   : > { %v1050_v12 = vadd.f32 %v1049_v10, %v963_v31 }
 0x123   : > { %v1098_v39 = vpop.f32.mrf.mxu3 }
 0x124   : > { %v1099_v14 = vadd.f32 %v1098_v39, %v1050_v12 }
 0x126   : > { %1113 = vst [vmem:[%s2243_s19] sm:$0xff] %v1099_v14  ;;  %v968_v41 = vpop.f32.mrf.mxu1 }
 0x127   : > { %v969_v62 = vadd.f32 %v968_v41, %v914_v45  ;;  %v918_v50 = vpop.f32.mrf.mxu0 }
 0x128   : > { %v919_v30 = vadd.f32 %v918_v50, %v851_v20 }
 0x129   : > { %v1053_v61 = vpop.f32.mrf.mxu2 }
 0x12a   : > { %v1054_v34 = vadd.f32 %v1053_v61, %v969_v62 }
 0x12b   : > { %v1102_v16 = vpop.f32.mrf.mxu3 }
 0x12c   : > { %v1103_v7 = vadd.f32 %v1102_v16, %v1054_v34 }
 0x12e   : > { %1114 = vst [vmem:[%s2243_s19 + $0x8] sm:$0xff] %v1103_v7  ;;  %v974_v49 = vpop.f32.mrf.mxu1 }
 0x12f   : > { %v975_v3 = vadd.f32 %v974_v49, %v919_v30  ;;  %v923_v24 = vpop.f32.mrf.mxu0 }
 0x130   : > { %v924_v21 = vadd.f32 %v923_v24, %v855_v17 }
 0x131   : > { %v1057_v5 = vpop.f32.mrf.mxu2 }
 0x132   : > { %v1058_v52 = vadd.f32 %v1057_v5, %v975_v3 }
 0x133   : > { %v1106_v0 = vpop.f32.mrf.mxu3 }
 0x134   : > { %v1107_v22 = vadd.f32 %v1106_v0, %v1058_v52 }
 0x136   : > { %1115 = vst [vmem:[%s2243_s19 + $0x10] sm:$0xff] %v1107_v22  ;;  %v980_v28 = vpop.f32.mrf.mxu1 }
 0x137   : > { %v981_v1 = vadd.f32 %v980_v28, %v924_v21 }
 0x139   : > { %v1061_v19 = vpop.f32.mrf.mxu2 }
 0x13a   : > { %v1062_v35 = vadd.f32 %v1061_v19, %v981_v1 }
 0x13b   : > { %v1110_v11 = vpop.f32.mrf.mxu3 }
 0x13c   : > { %v1111_v59 = vadd.f32 %v1110_v11, %v1062_v35 }
 0x13e   : > { %1116 = vst [vmem:[%s2243_s19 + $0x18] sm:$0xff] %v1111_v59 }
 0x13f   : > { %1414 = shalt.err (!%p1411_p0)
}
 0x140   : > { %s1480_s30 = smov 128   ;;  %s1481_s6 = smov 256  }
 0x141   : > { %s1482_s7 = smov 8  }
 0x142   : > { %1253 = dma.vmem_to_hbm [thread:$0]  (%p1579_p5), %s1133_s21, 512, %s1135_s22, %s1118_s12, %s1480_s30, %s1481_s6, %s1482_s7  }
 0x143 PF: > { %s1149_s17 = sand.u32 1, %s1453_s9   ;;  %p1264_p3 = pnand %p1236_p11, %p1547_p6 }
 0x144   : > { %s1150_s19 = scalar_lea.sflag [#allocation4], %s1149_s17 }
 0x145   : > { %p1265_p7 = pneg %p1264_p3 }
 0x147   : > { %1448 = dma.done.wait (%p1265_p7), %s1150_s19, 512  }
 0x148   : > { %1450 = vsyncadd (%p1265_p7), %s1150_s19, 4294966784  ;;  %s19_s14 = sadd.s32 1, %s1473_s14   ;;  %s2369_s9 = smov %s1457_s10 }
 0x149   : > { %p16_p9 = scmp.ge.s32.totalorder %s19_s14, 4   ;;  %s2370_s10 = smov %s1461_s11 }
 0x14a   : > { %s2371_s11 = smov %s1588_s8  ;;  %s2372_s12 = smov %s1469_s13 }
 0x14b   : > { %s2373_s13 = smov %s2375_s29  ;;  %18 = sbr.rel (!%p16_p9) target bundleno = 7 (0x7), region = 79 }
 0x150   :  { %1156 = vsyncpa [#allocation3], 1 }
 0x151   :  { %1158 = vsyncpa [#allocation3 + $0x1], 1 }
 0x152   :  { %1159 = vsyncpa [#allocation6], 1 }
 0x153   :  { %1161 = vsyncpa [#allocation6 + $0x1], 1 }
 0x154   :  { %1162 = vsyncpa [#allocation4], 1 }
 0x155   :  { %1164 = vsyncpa [#allocation4 + $0x1], 1 }

</bundles_post_ra>
